<compile_context>
chip_gen: v5e
topology: v5e:2x2
jax: 0.10.0
libtpu: 0.0.40
codegen_flags: <defaults>
</compile_context>

<pallas_src>
import jax
import jax.numpy as jnp
from jax import lax
from jax.experimental import pallas as pl
from jax.experimental.pallas import tpu as pltpu

EPSILON = 1e-6
_INV_SQRT_2PI = 0.3989422804014327   # 1/sqrt(2*pi)
_INV_SQRT_2 = 0.7071067811865476     # 1/sqrt(2)


def _lprelu_kernel(m_ref, v_ref, mo_ref, vo_ref):
    mean = m_ref[...]
    var = v_ref[...]

    v = jnp.maximum(var, EPSILON)        # torch.clamp(var, min=eps)
    s_inv = lax.rsqrt(v)                 # EUP: avoids sqrt + divide on the VPU
    z = mean * s_inv                     # == mean / sqrt(v)
    s = v * s_inv                        # == sqrt(v)

    pdf = jnp.exp(-0.5 * z * z) * _INV_SQRT_2PI       # exp(Normal.log_prob(z))
    cdf = 0.5 * (1.0 + lax.erf(z * _INV_SQRT_2))      # Normal.cdf(z)

    m_out = mean * cdf + s * pdf
    # Identical to (mean^2 + v)*cdf + mean*s*pdf - m_out^2, with fewer VALU ops:
    v_out = m_out * (mean - m_out) + v * cdf

    mo_ref[...] = m_out
    vo_ref[...] = v_out


def lprelu(mean, var, *, target_block_rows=512):
    """Elementwise moment-propagating ReLU. mean/var: same shape, float32."""
    assert mean.shape == var.shape
    orig_shape = mean.shape
    n = mean.size

    # Pick the widest lane count (multiple of 128) that divides the flat size
    # so the common path (conv activations) needs no pad/slice HBM passes and
    # output stores stay unmasked.  Fall back to padding to 512 lanes.
    lanes = None
    for cand in (512, 256, 128):
        if n % cand == 0:
            lanes = cand
            break
    m_flat = mean.reshape(-1)
    v_flat = var.reshape(-1)
    if lanes is None:
        lanes = 512
        pad = (lanes - n % lanes) % lanes
        m_flat = jnp.pad(m_flat, (0, pad))
        # pad variance with 1.0 so padded lanes stay numerically benign
        v_flat = jnp.pad(v_flat, (0, pad), constant_values=1.0)
    else:
        pad = 0
    rows = (n + pad) // lanes

    m2d = m_flat.reshape(rows, lanes)
    v2d = v_flat.reshape(rows, lanes)

    # ~1 MiB per block at the defaults (512 x 512 x f32); 2 inputs + 2 outputs
    # double-buffered ~= 8 MiB VMEM, comfortably inside the 16 MiB (v5e) /
    # 32 MiB (v6e/v7x) scoped defaults while large enough to amortize the
    # per-grid-step overhead (measured ~85% of HBM roofline at 512-wide tiles).
    # For small arrays, fall back to a single full-array block.
    tile_rows = min(target_block_rows, rows)
    grid = (pl.cdiv(rows, tile_rows),)
    # Note: a partial last block reads garbage in out-of-bounds rows; the op is
    # elementwise and those rows are never written back, so this is safe.

    spec = pl.BlockSpec((tile_rows, lanes), lambda i: (i, 0))

    m_out, v_out = pl.pallas_call(
        _lprelu_kernel,
        out_shape=(
            jax.ShapeDtypeStruct((rows, lanes), jnp.float32),
            jax.ShapeDtypeStruct((rows, lanes), jnp.float32),
        ),
        grid_spec=pltpu.PrefetchScalarGridSpec(
            num_scalar_prefetch=0,
            grid=grid,
            in_specs=[spec, spec],
            out_specs=[spec, spec],
        ),
        compiler_params=pltpu.CompilerParams(
            dimension_semantics=("parallel",)),  # shards grid across v7x's 2 TCs
    )(m2d, v2d)

    if pad:
        m_out = m_out.reshape(-1)[:n].reshape(orig_shape)
        v_out = v_out.reshape(-1)[:n].reshape(orig_shape)
    else:
        m_out = m_out.reshape(orig_shape)
        v_out = v_out.reshape(orig_shape)
    return m_out, v_out


def _lprelu_ref(mean, var):
    """Pure-JAX reference matching the PyTorch forward_relu exactly."""
    v = jnp.maximum(var, EPSILON)
    s = jnp.sqrt(v)
    z = mean / s
    pdf = jnp.exp(-0.5 * z * z) * _INV_SQRT_2PI
    cdf = 0.5 * (1.0 + lax.erf(z * _INV_SQRT_2))
    m_out = mean * cdf + s * pdf
    v_out = (mean * mean + v) * cdf + mean * s * pdf - m_out * m_out
    return m_out, v_out


if __name__ == "__main__":
    key = jax.random.PRNGKey(0)
    k_m, k_v = jax.random.split(key)

    # NCHW activations: batch=2, channels=4, spatial=16x16
    x_shape = (2, 4, 16, 16)
    input_mean = jax.random.normal(k_m, x_shape, dtype=jnp.float32)
    # variances are non-negative; include tiny values to exercise the clamp
    input_var = jnp.abs(jax.random.normal(k_v, x_shape, dtype=jnp.float32)) * 0.5
    input_var = input_var.at[0, 0, 0, :4].set(1e-9)

    m_out, v_out = lprelu(input_mean, input_var)
    jax.block_until_ready((m_out, v_out))

    m_ref, v_ref = _lprelu_ref(input_mean, input_var)
    assert m_out.shape == x_shape and v_out.shape == x_shape
    assert jnp.allclose(m_out, m_ref, atol=1e-5, rtol=1e-5)
    assert jnp.allclose(v_out, v_ref, atol=1e-5, rtol=1e-5)

    # Also exercise a non-512-aligned size to cover the fallback lane path.
    y_shape = (3, 5, 16, 16)   # 3840 elems: divisible by 128, not 512
    ym = jax.random.normal(k_m, y_shape, dtype=jnp.float32)
    yv = jnp.abs(jax.random.normal(k_v, y_shape, dtype=jnp.float32))
    ym_out, yv_out = lprelu(ym, yv)
    jax.block_until_ready((ym_out, yv_out))
    ym_ref, yv_ref = _lprelu_ref(ym, yv)
    assert jnp.allclose(ym_out, ym_ref, atol=1e-5, rtol=1e-5)
    assert jnp.allclose(yv_out, yv_ref, atol=1e-5, rtol=1e-5)

    print("KERNEL_OK")
</pallas_src>

<mosaic_0001>
module attributes {stable_mosaic.version = 11 : i64} {
  func.func @_lprelu_kernel(%arg0: i32, %arg1: memref<4x512xf32, #tpu.memory_space<vmem>>, %arg2: memref<4x512xf32, #tpu.memory_space<vmem>>, %arg3: memref<4x512xf32, #tpu.memory_space<vmem>>, %arg4: memref<4x512xf32, #tpu.memory_space<vmem>>) attributes {dimension_semantics = [#tpu.dimension_semantics<parallel>], iteration_bounds = array<i64: 1>, scalar_prefetch = 0 : i64, scratch_operands = 0 : i64, tpu.core_type = #tpu.core_type<tc>, window_params = [{transform_indices = @transform_0, window_bounds = array<i64: 4, 512>}, {transform_indices = @transform_1, window_bounds = array<i64: 4, 512>}, {transform_indices = @transform_2, window_bounds = array<i64: 4, 512>}, {transform_indices = @transform_3, window_bounds = array<i64: 4, 512>}]} {
    %c0 = arith.constant 0 : index
    %c0_0 = arith.constant 0 : index
    %0 = vector.load %arg1[%c0, %c0_0] : memref<4x512xf32, #tpu.memory_space<vmem>>, vector<4x512xf32>
    %c0_1 = arith.constant 0 : index
    %c0_2 = arith.constant 0 : index
    %1 = vector.load %arg2[%c0_1, %c0_2] : memref<4x512xf32, #tpu.memory_space<vmem>>, vector<4x512xf32>
    %cst = arith.constant 9.99999997E-7 : f32
    %2 = vector.broadcast %cst : f32 to vector<4x512xf32>
    %3 = arith.maximumf %1, %2 : vector<4x512xf32>
    %4 = math.rsqrt %3 : vector<4x512xf32>
    %5 = arith.mulf %0, %4 : vector<4x512xf32>
    %6 = arith.mulf %3, %4 : vector<4x512xf32>
    %cst_3 = arith.constant -5.000000e-01 : f32
    %7 = vector.broadcast %cst_3 : f32 to vector<4x512xf32>
    %8 = arith.mulf %7, %5 : vector<4x512xf32>
    %9 = arith.mulf %8, %5 : vector<4x512xf32>
    %10 = math.exp %9 : vector<4x512xf32>
    %cst_4 = arith.constant 0.398942292 : f32
    %11 = vector.broadcast %cst_4 : f32 to vector<4x512xf32>
    %12 = arith.mulf %10, %11 : vector<4x512xf32>
    %cst_5 = arith.constant 0.707106769 : f32
    %13 = vector.broadcast %cst_5 : f32 to vector<4x512xf32>
    %14 = arith.mulf %5, %13 : vector<4x512xf32>
    %15 = math.erf %14 : vector<4x512xf32>
    %cst_6 = arith.constant 1.000000e+00 : f32
    %16 = vector.broadcast %cst_6 : f32 to vector<4x512xf32>
    %17 = arith.addf %16, %15 : vector<4x512xf32>
    %cst_7 = arith.constant 5.000000e-01 : f32
    %18 = vector.broadcast %cst_7 : f32 to vector<4x512xf32>
    %19 = arith.mulf %18, %17 : vector<4x512xf32>
    %20 = arith.mulf %0, %19 : vector<4x512xf32>
    %21 = arith.mulf %6, %12 : vector<4x512xf32>
    %22 = arith.addf %20, %21 : vector<4x512xf32>
    %23 = arith.subf %0, %22 : vector<4x512xf32>
    %24 = arith.mulf %22, %23 : vector<4x512xf32>
    %25 = arith.mulf %3, %19 : vector<4x512xf32>
    %26 = arith.addf %24, %25 : vector<4x512xf32>
    %c0_8 = arith.constant 0 : index
    %c0_9 = arith.constant 0 : index
    %27 = vector.load %arg3[%c0_8, %c0_9] : memref<4x512xf32, #tpu.memory_space<vmem>>, vector<4x512xf32>
    tpu.vector_store %arg3[%c0_8, %c0_9], %22 {strides = array<i32>} : memref<4x512xf32, #tpu.memory_space<vmem>>, vector<4x512xf32>,
    %c0_10 = arith.constant 0 : index
    %c0_11 = arith.constant 0 : index
    %28 = vector.load %arg4[%c0_10, %c0_11] : memref<4x512xf32, #tpu.memory_space<vmem>>, vector<4x512xf32>
    tpu.vector_store %arg4[%c0_10, %c0_11], %26 {strides = array<i32>} : memref<4x512xf32, #tpu.memory_space<vmem>>, vector<4x512xf32>,
    return
  }
  func.func @transform_0(%arg0: i32) -> (i32, i32) {
    %c0_i32 = arith.constant 0 : i32
    %c0_i32_0 = arith.constant 0 : i32
    return %arg0, %c0_i32 : i32, i32
  }
  func.func @transform_1(%arg0: i32) -> (i32, i32) {
    %c0_i32 = arith.constant 0 : i32
    %c0_i32_0 = arith.constant 0 : i32
    return %arg0, %c0_i32 : i32, i32
  }
  func.func @transform_2(%arg0: i32) -> (i32, i32) {
    %c0_i32 = arith.constant 0 : i32
    %c0_i32_0 = arith.constant 0 : i32
    return %arg0, %c0_i32 : i32, i32
  }
  func.func @transform_3(%arg0: i32) -> (i32, i32) {
    %c0_i32 = arith.constant 0 : i32
    %c0_i32_0 = arith.constant 0 : i32
    return %arg0, %c0_i32 : i32, i32
  }
}

</mosaic_0001>

<bundles_post_ra>
// kernel: tpu_custom_call.1
= control target key start
LH: loop header
LB: loop body
LE: loop exit
PB: predicated region body
PF: predicated region fallthrough
CT: control target
= control target key end

     0   :  { %9 = vsyncpa [#allocation3], 0  ;;  %s421_s0 = inlined_call_operand.hbm [shape: f32[4,512], index: 0, kind: input, shape index: {}]   ;;  %s422_s1 = inlined_call_operand.hbm [shape: f32[4,512], index: 1, kind: input, shape index: {}]   ;;  %s423_s2 = inlined_call_operand.hbm [shape: f32[4,512], index: 2, kind: output, shape index: {0}]   ;;  %s424_s3 = inlined_call_operand.hbm [shape: f32[4,512], index: 3, kind: output, shape index: {1}]  }
   0x1   :  { %10 = vsyncpa [#allocation6], 0 }
   0x2   :  { %11 = vsyncpa [#allocation4], 0 }
   0x3   :  { %12 = vsyncpa [#allocation9], 0  ;;  %s18_s14 = sshll.u32 %s421_s0, 4  ;;  %s343_s15 = smov [#allocation2]   ;;  %s19_s14 = int_to_ptr.hbm [resolvable:$true] %s18_s14 }
   0x4   :  { %s20_s16 = sshll.u32 %s343_s15, 4  ;;  %s29_s19 = sshll.u32 %s422_s1, 4  ;;  %s21_s16 = int_to_ptr.vmem [resolvable:$true] %s20_s16  ;;  %s30_s19 = int_to_ptr.hbm [resolvable:$true] %s29_s19 }
   0x5   :  { %23 = dma.hbm_to_vmem [thread:$0]  %s19_s14, 256, %s21_s16, [#allocation3]  }
   0x6   :  { %s344_s20 = smov [#allocation5]  }
   0x7   :  { %s31_s21 = sshll.u32 %s344_s20, 4  ;;  %s32_s21 = int_to_ptr.vmem [resolvable:$true] %s31_s21 }
   0x8   :  { %34 = dma.hbm_to_vmem [thread:$0]  %s30_s19, 256, %s32_s21, [#allocation6]  }
   0x9   :  { %335 = dma.done.wait [#allocation3], 256  }
   0xa   :  { %336 = vsyncadd [#allocation3], 4294967040 }
   0xb   :  { %337 = dma.done.wait [#allocation6], 256  }
   0xc   :  { %338 = vsyncadd [#allocation6], 4294967040  ;;  %v45_v0 = vld [vmem:[#allocation5] sm:$0xff]  ;;  %v46_v2 = vld [vmem:[#allocation5 + $0x8] sm:$0xff]  ;;  %s345_s0 = smov [#allocation7]   ;;  %s194_s24 = sshll.u32 %s423_s2, 4  ;;  %s195_s24 = int_to_ptr.hbm [resolvable:$true] %s194_s24 }
   0xd   :  { %v373_v1 = vmax.f32 %v45_v0, 1e-06  ;;  %v375_v3 = vmax.f32 %v46_v2, 1e-06  ;;  %v383_v14 = vld [vmem:[#allocation2] sm:$0xff]  ;;  %v385_v16 = vld [vmem:[#allocation2 + $0x8] sm:$0xff] }
   0xe   :  { %s192_s1 = sshll.u32 %s345_s0, 4  ;;  %s346_s25 = smov [#allocation8]   ;;  %s193_s1 = int_to_ptr.vmem [resolvable:$true] %s192_s1 }
   0xf   :  { %227 = vrsqrt.f32 %v373_v1  ;;  %vm55_vm0 = vweird.f32 %v373_v1  ;;  %vm65_vm2 = vweird.f32 %v375_v3  ;;  %s203_s26 = sshll.u32 %s346_s25, 4  ;;  %s205_s28 = sshll.u32 %s424_s3, 4  ;;  %s204_s26 = int_to_ptr.vmem [resolvable:$true] %s203_s26  ;;  %s206_s28 = int_to_ptr.hbm [resolvable:$true] %s205_s28 }
  0x10   :  { %229 = vrsqrt.f32 %v375_v3 }
  0x15   :  { %v228_v4 = vpop.eup %227 }
  0x16   :  { %v230_v5 = vpop.eup %229  ;;  %v50_v6 = vmul.f32 %v228_v4, %v373_v1  ;;  %vm56_vm1 = vweird.f32 %v228_v4 }
  0x17   :  { %v60_v7 = vmul.f32 %v230_v5, %v375_v3  ;;  %vm66_vm3 = vweird.f32 %v230_v5  ;;  %vm57_vm4 = vmor %vm55_vm0, %vm56_vm1 }
  0x18   :  { %v51_v8 = vmul.f32 %v228_v4, %v50_v6  ;;  %vm67_vm5 = vmor %vm65_vm2, %vm66_vm3 }
  0x19   :  { %v61_v9 = vmul.f32 %v230_v5, %v60_v7 }
  0x1a   :  { %v52_v10 = vmul.f32 0.5, %v51_v8 }
  0x1b   :  { %v62_v11 = vmul.f32 0.5, %v61_v9 }
  0x1c   :  { %v53_v12 = vsub.f32 1.5, %v52_v10 }
  0x1d   :  { %v63_v13 = vsub.f32 1.5, %v62_v11 }
  0x1e   :  { %v54_v15 = vmul.f32 %v228_v4, %v53_v12 }
  0x1f   :  { %v64_v17 = vmul.f32 %v230_v5, %v63_v13 }
  0x20   :  { %v387_v18 = vsel %vm57_vm4, %v228_v4, %v54_v15 }
  0x21   :  { %v69_v19 = vmul.f32 %v387_v18, %v383_v14  ;;  %v391_v20 = vsel %vm67_vm5, %v230_v5, %v64_v17 }
  0x22   :  { %v70_v21 = vmul.f32 %v391_v20, %v385_v16 }
  0x23   :  { %v395_v22 = vmul.f32 0.70710677, %v69_v19  ;;  %v73_v55 = vmul.f32 -0.5, %v69_v19 }
  0x24   :  { %v397_v23 = vmul.f32 0.70710677, %v70_v21  ;;  %v74_v0 = vmul.f32 -0.5, %v70_v21 }
  0x25   :  { %v85_v24 = vmul.f32 %v395_v22, %v395_v22  ;;  %v75_v62 = vmul.f32 %v73_v55, %v69_v19 }
  0x26   :  { %v125_v25 = vmul.f32 %v397_v23, %v397_v23  ;;  %v76_v7 = vmul.f32 %v74_v0, %v70_v21 }
  0x27   :  { %v86_v26 = vmin.f32 %v85_v24, 16.0  ;;  %v77_v5 = vmul.f32 1.442695, %v75_v62 }
  0x28   :  { %v126_v27 = vmin.f32 %v125_v25, 16.0  ;;  %v79_v13 = vmul.f32 1.442695, %v76_v7 }
  0x29   :  { %v87_v28 = vmul.f32 2.1237322e-06, %v86_v26  ;;  %v98_v29 = vmul.f32 3.8918573e-05, %v86_v26 }
  0x2a   :  { %v127_v30 = vmul.f32 2.1237322e-06, %v126_v27  ;;  %v138_v31 = vmul.f32 3.8918573e-05, %v126_v27 }
  0x2b   :  { %v88_v32 = vadd.f32 0.00028619796, %v87_v28  ;;  %v99_v33 = vadd.f32 0.001143296, %v98_v29 }
  0x2c   :  { %v128_v34 = vadd.f32 0.00028619796, %v127_v30  ;;  %v139_v35 = vadd.f32 0.001143296, %v138_v31 }
  0x2d   :  { %v89_v36 = vmul.f32 %v88_v32, %v86_v26  ;;  %v100_v37 = vmul.f32 %v99_v33, %v86_v26 }
  0x2e   :  { %v129_v38 = vmul.f32 %v128_v34, %v126_v27  ;;  %v140_v39 = vmul.f32 %v139_v35, %v126_v27 }
  0x2f   :  { %v90_v40 = vadd.f32 0.0036580483, %v89_v36  ;;  %v101_v41 = vadd.f32 0.014752088, %v100_v37 }
  0x30   :  { %v130_v42 = vadd.f32 0.0036580483, %v129_v38  ;;  %v141_v43 = vadd.f32 0.014752088, %v140_v39 }
  0x31   :  { %v91_v44 = vmul.f32 %v90_v40, %v86_v26  ;;  %v102_v45 = vmul.f32 %v101_v41, %v86_v26 }
  0x32   :  { %v131_v46 = vmul.f32 %v130_v42, %v126_v27  ;;  %v142_v47 = vmul.f32 %v141_v43, %v126_v27 }
  0x33   :  { %v103_v48 = vadd.f32 0.112945676, %v102_v45  ;;  %v92_v49 = vadd.f32 0.05243302, %v91_v44  ;;  %v71_v44 = vmul.f32 %v387_v18, %v373_v1 }
  0x34   :  { %v143_v50 = vadd.f32 0.112945676, %v142_v47  ;;  %v132_v52 = vadd.f32 0.05243302, %v131_v46  ;;  %v72_v46 = vmul.f32 %v391_v20, %v375_v3 }
  0x35   :  { %v104_v51 = vmul.f32 %v103_v48, %v86_v26  ;;  %v93_v56 = vmul.f32 %v92_v49, %v86_v26 }
  0x36   :  { %v144_v53 = vmul.f32 %v143_v50, %v126_v27  ;;  %v133_v59 = vmul.f32 %v132_v52, %v126_v27 }
  0x37   :  { %v105_v54 = vadd.f32 0.4994258, %v104_v51  ;;  %v94_v63 = vadd.f32 0.18741608, %v93_v56 }
  0x38   :  { %v145_v57 = vadd.f32 0.4994258, %v144_v53  ;;  %v134_v4 = vadd.f32 0.18741608, %v133_v59 }
  0x39   :  { %v106_v58 = vmul.f32 %v105_v54, %v86_v26  ;;  %v95_v6 = vmul.f32 %v94_v63, %v86_v26 }
  0x3a   :  { %v146_v60 = vmul.f32 %v145_v57, %v126_v27  ;;  %v135_v8 = vmul.f32 %v134_v4, %v126_v27 }
  0x3b   :  { %v107_v61 = vadd.f32 1.0, %v106_v58  ;;  %v96_v11 = vadd.f32 1.1283791, %v95_v6 }
  0x3c   :  { %v147_v2 = vadd.f32 1.0, %v146_v60  ;;  %v136_v17 = vadd.f32 1.1283791, %v135_v8 }
  0x3d   :  { %231 = vrcp.f32 %v107_v61  ;;  %vm113_vm6 = vweird.f32 %v107_v61  ;;  %v119_v15 = vand.u32 2147483648, %v107_v61  ;;  %v117_v25 = vand.u32 2147483647, %v107_v61 }
  0x3e   :  { %233 = vrcp.f32 %v147_v2  ;;  %v159_v28 = vand.u32 2147483648, %v147_v2  ;;  %vm153_vm8 = vweird.f32 %v147_v2  ;;  %v157_v26 = vand.u32 2147483647, %v147_v2 }
  0x3f   :  { %235 = vpow2.f32 %v77_v5  ;;  %v120_v27 = vor.u32 1.1754944e-38, %v119_v15  ;;  %v97_v32 = vmul.f32 %v96_v11, %v395_v22  ;;  %vm118_vm11 = vcmp.eq.f32.partialorder %v117_v25, 8.507059e+37 }
  0x40   :  { %237 = vpow2.f32 %v79_v13  ;;  %v160_v34 = vor.u32 1.1754944e-38, %v159_v28  ;;  %v137_v35 = vmul.f32 %v136_v17, %v397_v23  ;;  %vm158_vm13 = vcmp.eq.f32.partialorder %v157_v26, 8.507059e+37 }
  0x43   :  { %v232_v9 = vpop.eup %231 }
  0x44   :  { %v234_v10 = vpop.eup %233  ;;  %v109_v12 = vmul.f32 %v232_v9, %v107_v61  ;;  %vm114_vm7 = vweird.f32 %v232_v9 }
  0x45   :  { %v149_v19 = vmul.f32 %v234_v10, %v147_v2  ;;  %vm154_vm9 = vweird.f32 %v234_v10  ;;  %vm115_vm10 = vmor %vm113_vm6, %vm114_vm7  ;;  %v236_v31 = vpop.eup %235 }
  0x46   :  { %v110_v24 = vsub.f32 1.0, %v109_v12  ;;  %vm155_vm12 = vmor %vm153_vm8, %vm154_vm9  ;;  %v238_v40 = vpop.eup %237  ;;  %v81_v45 = vmul.f32 0.3989423, %v236_v31 }
  0x47   :  { %v150_v29 = vsub.f32 1.0, %v149_v19  ;;  %v82_v47 = vmul.f32 0.3989423, %v238_v40 }
  0x48   :  { %v111_v21 = vmul.f32 %v232_v9, %v110_v24  ;;  %v171_v51 = vmul.f32 %v81_v45, %v71_v44 }
  0x49   :  { %v151_v30 = vmul.f32 %v234_v10, %v150_v29  ;;  %v172_v53 = vmul.f32 %v82_v47, %v72_v46 }
  0x4a   :  { %v112_v33 = vadd.f32 %v232_v9, %v111_v21 }
  0x4b   :  { %v152_v36 = vadd.f32 %v234_v10, %v151_v30 }
  0x4c   :  { %v116_v37 = vsel %vm115_vm10, %v232_v9, %v112_v33 }
  0x4d   :  { %v121_v38 = vsel %vm118_vm11, %v120_v27, %v116_v37  ;;  %v156_v39 = vsel %vm155_vm12, %v234_v10, %v152_v36 }
  0x4e   :  { %v122_v41 = vmul.f32 %v121_v38, %v97_v32  ;;  %v161_v42 = vsel %vm158_vm13, %v160_v34, %v156_v39 }
  0x4f   :  { %v162_v43 = vmul.f32 %v161_v42, %v137_v35 }
  0x50   :  { %v221_v22 = vclamps-f32 %v122_v41, 1.0 }
  0x51   :  { %v222_v48 = vclamps-f32 %v162_v43, 1.0 }
  0x52   :  { %v165_v23 = vadd.f32 1.0, %v221_v22 }
  0x53   :  { %v166_v49 = vadd.f32 1.0, %v222_v48 }
  0x54   :  { %v167_v50 = vmul.f32 0.5, %v165_v23 }
  0x55   :  { %v168_v52 = vmul.f32 0.5, %v166_v49 }
  0x56   :  { %v169_v54 = vmul.f32 %v167_v50, %v383_v14  ;;  %v179_v57 = vmul.f32 %v167_v50, %v373_v1 }
  0x57   :  { %v170_v18 = vmul.f32 %v168_v52, %v385_v16  ;;  %v180_v59 = vmul.f32 %v168_v52, %v375_v3 }
  0x58   :  { %v173_v55 = vadd.f32 %v171_v51, %v169_v54 }
  0x59   :  { %v174_v20 = vadd.f32 %v172_v53, %v170_v18 }
  0x5a   :  { %183 = vst [vmem:[#allocation7] sm:$0xff] %v173_v55  ;;  %v175_v56 = vsub.f32 %v383_v14, %v173_v55 }
  0x5b   :  { %184 = vst [vmem:[#allocation7 + $0x8] sm:$0xff] %v174_v20  ;;  %v176_v58 = vsub.f32 %v385_v16, %v174_v20 }
  0x5c   :  { %v177_v60 = vmul.f32 %v175_v56, %v173_v55  ;;  %197 = dma.vmem_to_hbm [thread:$0]  %s193_s1, 256, %s195_s24, [#allocation4]  }
  0x5d   :  { %v178_v61 = vmul.f32 %v176_v58, %v174_v20 }
  0x5e   :  { %v181_v62 = vadd.f32 %v179_v57, %v177_v60 }
  0x5f   :  { %v182_v63 = vadd.f32 %v180_v59, %v178_v61 }
  0x60   :  { %185 = vst [vmem:[#allocation8] sm:$0xff] %v181_v62 }
  0x61   :  { %186 = vst [vmem:[#allocation8 + $0x8] sm:$0xff] %v182_v63 }
  0x62   :  { %208 = dma.vmem_to_hbm [thread:$0]  %s204_s26, 256, %s206_s28, [#allocation9]  }
  0x63   :  { %339 = dma.done.wait [#allocation4], 256  }
  0x64   :  { %340 = vsyncadd [#allocation4], 4294967040 }
  0x65   :  { %341 = dma.done.wait [#allocation9], 256  }
  0x66   :  { %342 = vsyncadd [#allocation9], 4294967040 }
  0x67   :  { %217 = vsyncpa [#allocation3], 1 }
  0x68   :  { %218 = vsyncpa [#allocation6], 1 }
  0x69   :  { %219 = vsyncpa [#allocation4], 1 }
  0x6a   :  { %220 = vsyncpa [#allocation9], 1 }

</bundles_post_ra>
